<compile_context>
chip_gen: v7x
topology: tpu7x:2x2x1
jax: 0.10.0
libtpu: 0.0.40
codegen_flags: <defaults>
</compile_context>

<pallas_src>
import math

import numpy as np
import jax
import jax.numpy as jnp
from jax import lax
from jax.experimental import pallas as pl
from jax.experimental.pallas import tpu as pltpu

# ----------------------- module configuration (__init__) ----------------------
CHANNELS = 4
HIDDEN_CHANNELS = 32
KERNEL_SIZE = 3
DILATION_RATE = 2
N_LAYERS = 2
P_DROPOUT = 0.0
GIN_CHANNELS = 0
MEAN_ONLY = False
HALF_CHANNELS = CHANNELS // 2

# ------------------------------- problem sizes --------------------------------
BATCH = 2
T_LEN = 16

# Halo rows between/around batch segments = largest conv offset magnitude.
HALO = max((KERNEL_SIZE * (DILATION_RATE ** i) - DILATION_RATE ** i) // 2
           for i in range(N_LAYERS))                      # = 2
SEG = T_LEN + 2 * HALO                                    # 20 rows per batch
R_PAD = BATCH * SEG                                       # 40 rows total
assert R_PAD % 8 == 0, "collapsed row count should be sublane aligned"

# Activation slab lanes: [x0 (half) | x1 (half) | mask (1) | zero pad]
ACT_W = 8
# Output slab lanes:     [x1_new (half) | per-row logdet (1) | zero pad]
OUT_W = 4

# ------------------------- parameter slab row layout ---------------------------
H = HIDDEN_CHANNELS
P_W = 2 * H                                               # 64 lanes
ROW_PRE = 0                                               # 8 rows  (only half used)
ROW_IN = [ACT_W + i * KERNEL_SIZE * H for i in range(N_LAYERS)]      # 96 rows each
ROW_RS = [ACT_W + N_LAYERS * KERNEL_SIZE * H + i * H for i in range(N_LAYERS)]
ROW_POST = ACT_W + N_LAYERS * KERNEL_SIZE * H + N_LAYERS * H          # 32 rows
ROW_BIAS = ROW_POST + H                                                # 8 rows
P_ROWS = ROW_BIAS + 8                                                  # 304


# ------------------------------ in-kernel helpers -----------------------------
def _sigmoid(x):
    # explicit exp-based sigmoid (lowers cleanly in Mosaic; matches reference)
    return 1.0 / (1.0 + jnp.exp(-x))


def _row_roll(y, off):
    """z[r] = y[(r + off) % R] for a static off.

    With the halo-padded row layout the wrapped rows only ever land on halo
    rows (whose outputs are masked away), so no zeroing is needed.  Implemented
    as a static slice + sublane concat; pltpu.roll would be equivalent here.
    """
    if off == 0:
        return y
    off = off % y.shape[0]
    return jnp.concatenate([y[off:], y[:off]], axis=0)


# --------------------------------- the kernel ---------------------------------
def coupling_kernel(act_ref, p_ref, out_ref):
    half = HALF_CHANNELS
    act = act_ref[...]                                    # (R, 8)
    x1 = act[:, half:2 * half]                            # (R, half)
    msk = act[:, 2 * half:2 * half + 1]                   # (R, 1)

    bias = p_ref[ROW_BIAS:ROW_BIAS + 8, :]                # (8, 64), one aligned load

    # ---- pre 1x1 conv as a single MXU dot: (R, 8) x (8, H) ----
    # weight rows for the x1 / mask / pad lanes are zero, so only x0 contributes
    w_pre = p_ref[ROW_PRE:ROW_PRE + ACT_W, 0:H]           # (8, H)
    b_pre = bias[0:1, 0:H]                                 # (1, H)
    h = (jnp.dot(act, w_pre, preferred_element_type=jnp.float32) + b_pre) * msk

    # ---- WaveNet encoder: one fused (R, K*H) x (K*H, 2H) dot per layer ----
    out_skip = jnp.zeros((R_PAD, H), jnp.float32)
    for i in range(N_LAYERS):
        dil = DILATION_RATE ** i
        pad_i = (KERNEL_SIZE * dil - dil) // 2
        taps = [_row_roll(h, k * dil - pad_i) for k in range(KERNEL_SIZE)]
        x_cat = jnp.concatenate(taps, axis=1)             # (R, K*H)

        w_in = p_ref[ROW_IN[i]:ROW_IN[i] + KERNEL_SIZE * H, :]   # (K*H, 2H)
        b_in = bias[1 + i:2 + i, :]                               # (1, 2H)
        z = jnp.dot(x_cat, w_in, preferred_element_type=jnp.float32) + b_in

        # fused_add_tanh_sigmoid_multiply (g = None); dropout p=0 -> identity
        acts = jnp.tanh(z[:, :H]) * _sigmoid(z[:, H:])

        b_rs = bias[1 + N_LAYERS + i:2 + N_LAYERS + i, :]         # (1, 2H)
        if i < N_LAYERS - 1:
            w_rs = p_ref[ROW_RS[i]:ROW_RS[i] + H, :]              # (H, 2H) [res|skip]
            rs = jnp.dot(acts, w_rs, preferred_element_type=jnp.float32) + b_rs
            h = (h + rs[:, :H]) * msk
            out_skip = out_skip + rs[:, H:]
        else:  # last layer: all output channels go to the skip path (no zero res packed)
            w_sk = p_ref[ROW_RS[i]:ROW_RS[i] + H, 0:H]            # (H, H)
            out_skip = out_skip + (
                jnp.dot(acts, w_sk, preferred_element_type=jnp.float32) + b_rs[:, 0:H])
    out_skip = out_skip * msk

    # ---- post 1x1 conv, m|logs fused into one (H, 2*half) dot ----
    w_post = p_ref[ROW_POST:ROW_POST + H, 0:2 * half]             # (H, 2*half)
    b_post = bias[1 + 2 * N_LAYERS:2 + 2 * N_LAYERS, 0:2 * half]  # (1, 2*half)
    stats = (jnp.dot(out_skip, w_post, preferred_element_type=jnp.float32) + b_post) * msk
    m_stat = stats[:, 0:half]
    logs = stats[:, half:2 * half]

    # ---- affine coupling + per-row logdet (segment-summed in the wrapper) ----
    x1n = m_stat + x1 * jnp.exp(logs) * msk
    rowld = jnp.sum(logs, axis=-1, keepdims=True)                 # (R, 1)
    pad_c = jnp.zeros((R_PAD, OUT_W - half - 1), jnp.float32)
    out_ref[...] = jnp.concatenate([x1n, rowld, pad_c], axis=1)


# ------------------------------- wrapper / glue --------------------------------
def _full_spec(shape):
    return pl.BlockSpec(shape, lambda i, _n=len(shape): (0,) * _n)


def coupling_forward(x, x_mask, param_slab):
    """x: (B, C, T), x_mask: (B, 1, T), param_slab: pre-packed (P_ROWS, P_W)."""
    B, T, half = BATCH, T_LEN, HALF_CHANNELS
    x0 = x[:, :half, :]
    x1 = x[:, half:, :]

    # Build the single activation slab: halo-padded rows, 8 lanes.
    x0_r = jnp.transpose(x0, (0, 2, 1)).astype(jnp.float32)       # (B, T, half)
    x1_r = jnp.transpose(x1, (0, 2, 1)).astype(jnp.float32)       # (B, T, half)
    m_r = jnp.transpose(x_mask, (0, 2, 1)).astype(jnp.float32)    # (B, T, 1)
    pad_lanes = jnp.zeros((B, T, ACT_W - 2 * half - 1), jnp.float32)
    core = jnp.concatenate([x0_r, x1_r, m_r, pad_lanes], axis=2)  # (B, T, 8)
    core = jnp.pad(core, ((0, 0), (HALO, HALO), (0, 0)))          # (B, SEG, 8)
    act_slab = core.reshape(B * SEG, ACT_W)

    out_slab = pl.pallas_call(
        coupling_kernel,
        out_shape=jax.ShapeDtypeStruct((R_PAD, OUT_W), jnp.float32),
        grid=(1,),
        in_specs=[_full_spec((R_PAD, ACT_W)), _full_spec((P_ROWS, P_W))],
        out_specs=_full_spec((R_PAD, OUT_W)),
        compiler_params=pltpu.CompilerParams(dimension_semantics=("arbitrary",)),
    )(act_slab, param_slab)

    out3 = out_slab.reshape(B, SEG, OUT_W)
    x1_new = jnp.transpose(out3[:, HALO:HALO + T, :half], (0, 2, 1))  # (B, half, T)
    logdet = jnp.sum(out3[:, :, half], axis=1)                        # (B,) halo rows are 0
    x_out = jnp.concatenate([x0, x1_new], axis=1)
    return x_out, logdet


# -------------------- one-time parameter packing (NOT per call) -----------------
def pack_params(p):
    """PyTorch-layout params -> one channels-last f32 slab (P_ROWS, P_W)."""
    half, K = HALF_CHANNELS, KERNEL_SIZE
    slab = np.zeros((P_ROWS, P_W), np.float32)

    # pre 1x1 conv (H, half, 1) -> (half, H), padded to ACT_W contraction rows
    slab[ROW_PRE:ROW_PRE + half, :H] = np.asarray(p["pre_w"][:, :, 0]).T
    slab[ROW_BIAS + 0, :H] = np.asarray(p["pre_b"])

    for i in range(N_LAYERS):
        iw = np.asarray(p["in_w"][i])                     # (2H, H, K)
        for k in range(K):
            slab[ROW_IN[i] + k * H:ROW_IN[i] + (k + 1) * H, :2 * H] = iw[:, :, k].T
        slab[ROW_BIAS + 1 + i, :2 * H] = np.asarray(p["in_b"][i])

        rw = np.asarray(p["rs_w"][i])[:, :, 0]            # (2H or H, H)
        rb = np.asarray(p["rs_b"][i])
        if i < N_LAYERS - 1:
            slab[ROW_RS[i]:ROW_RS[i] + H, :H] = rw[:H].T          # res
            slab[ROW_RS[i]:ROW_RS[i] + H, H:2 * H] = rw[H:].T     # skip
            slab[ROW_BIAS + 1 + N_LAYERS + i, :H] = rb[:H]
            slab[ROW_BIAS + 1 + N_LAYERS + i, H:2 * H] = rb[H:]
        else:  # last layer: skip only (no zero res block packed)
            slab[ROW_RS[i]:ROW_RS[i] + H, :H] = rw.T
            slab[ROW_BIAS + 1 + N_LAYERS + i, :H] = rb

    # post 1x1 conv (2*half, H, 1) -> (H, 2*half) [m | logs]
    slab[ROW_POST:ROW_POST + H, :2 * half] = np.asarray(p["post_w"][:, :, 0]).T
    slab[ROW_BIAS + 1 + 2 * N_LAYERS, :2 * half] = np.asarray(p["post_b"])
    return jnp.asarray(slab)


# ------------------------- deterministic parameter init ------------------------
def init_params(key):
    half = HALF_CHANNELS
    K = KERNEL_SIZE
    ks = list(jax.random.split(key, 4 + 4 * N_LAYERS))

    def nxt():
        return ks.pop(0)

    p = {
        "pre_w": jax.random.normal(nxt(), (H, half, 1), jnp.float32) / math.sqrt(half),
        "pre_b": 0.01 * jax.random.normal(nxt(), (H,), jnp.float32),
        "in_w": [], "in_b": [], "rs_w": [], "rs_b": [],
    }
    for i in range(N_LAYERS):
        p["in_w"].append(jax.random.normal(nxt(), (2 * H, H, K), jnp.float32)
                         / math.sqrt(H * K))
        p["in_b"].append(0.01 * jax.random.normal(nxt(), (2 * H,), jnp.float32))
        rs_out = 2 * H if i < N_LAYERS - 1 else H
        p["rs_w"].append(jax.random.normal(nxt(), (rs_out, H, 1), jnp.float32)
                         / math.sqrt(H))
        p["rs_b"].append(0.01 * jax.random.normal(nxt(), (rs_out,), jnp.float32))
    # The PyTorch module zero-initializes `post`; small random weights are used
    # here so the coupling transform (exp(logs), logdet) is actually exercised.
    p["post_w"] = 0.1 * jax.random.normal(nxt(), (2 * half, H, 1), jnp.float32) / math.sqrt(H)
    p["post_b"] = 0.01 * jax.random.normal(nxt(), (2 * half,), jnp.float32)
    return p


# ------------------------------ pure-JAX reference ------------------------------
def reference_forward(x, x_mask, p):
    half = HALF_CHANNELS
    prec = lax.Precision.HIGHEST
    x0, x1 = x[:, :half, :], x[:, half:, :]

    h = jnp.einsum("bct,hc->bht", x0, p["pre_w"][:, :, 0],
                   precision=prec) + p["pre_b"][None, :, None]
    h = h * x_mask

    output = jnp.zeros_like(h)
    for i in range(N_LAYERS):
        dil = DILATION_RATE ** i
        pad = (KERNEL_SIZE * dil - dil) // 2
        x_in = lax.conv_general_dilated(
            h, p["in_w"][i], window_strides=(1,), padding=[(pad, pad)],
            rhs_dilation=(dil,), dimension_numbers=("NCH", "OIH", "NCH"),
            precision=prec) + p["in_b"][i][None, :, None]
        acts = jnp.tanh(x_in[:, :H]) * _sigmoid(x_in[:, H:])
        rs = jnp.einsum("bct,oc->bot", acts, p["rs_w"][i][:, :, 0],
                        precision=prec) + p["rs_b"][i][None, :, None]
        if i < N_LAYERS - 1:
            h = (h + rs[:, :H]) * x_mask
            output = output + rs[:, H:]
        else:
            output = output + rs
    output = output * x_mask

    stats = jnp.einsum("bct,oc->bot", output, p["post_w"][:, :, 0],
                       precision=prec) + p["post_b"][None, :, None]
    stats = stats * x_mask
    m, logs = stats[:, :half], stats[:, half:]
    x1n = m + x1 * jnp.exp(logs) * x_mask
    x_out = jnp.concatenate([x0, x1n], axis=1)
    logdet = jnp.sum(logs, axis=(1, 2))
    return x_out, logdet


# ------------------------------------- main -------------------------------------
if __name__ == "__main__":
    key = jax.random.PRNGKey(0)
    kx, kparam = jax.random.split(key)
    x = jax.random.normal(kx, (BATCH, CHANNELS, T_LEN), jnp.float32)
    x_mask = jnp.ones((BATCH, 1, T_LEN), jnp.float32).at[1, :, 12:].set(0.0)

    params = init_params(kparam)
    param_slab = pack_params(params)        # one-time packing, outside the hot path

    fwd = jax.jit(coupling_forward)
    x_out, logdet = fwd(x, x_mask, param_slab)
    jax.block_until_ready((x_out, logdet))

    x_ref, logdet_ref = reference_forward(x, x_mask, params)

    assert x_out.shape == (BATCH, CHANNELS, T_LEN) and logdet.shape == (BATCH,)
    assert bool(jnp.all(jnp.isfinite(x_out))) and bool(jnp.all(jnp.isfinite(logdet)))
    err_x = float(jnp.max(jnp.abs(x_out - x_ref)))
    err_ld = float(jnp.max(jnp.abs(logdet - logdet_ref)))
    assert err_x < 5e-3, f"x mismatch: {err_x}"
    assert err_ld < 2e-2, f"logdet mismatch: {err_ld}"
    print("KERNEL_OK")
</pallas_src>

<mosaic_0001>
module attributes {stable_mosaic.version = 11 : i64} {
  func.func @coupling_kernel(%arg0: i32, %arg1: memref<40x8xf32, #tpu.memory_space<vmem>>, %arg2: memref<304x64xf32, #tpu.memory_space<vmem>>, %arg3: memref<40x4xf32, #tpu.memory_space<vmem>>) attributes {dimension_semantics = [#tpu.dimension_semantics<arbitrary>], iteration_bounds = array<i64: 1>, scalar_prefetch = 0 : i64, scratch_operands = 0 : i64, tpu.core_type = #tpu.core_type<tc>, window_params = [{pipeline_mode = #tpu.pipeline_mode<synchronous>, transform_indices = @transform_0, window_bounds = array<i64: 40, 8>}, {pipeline_mode = #tpu.pipeline_mode<synchronous>, transform_indices = @transform_1, window_bounds = array<i64: 304, 64>}, {pipeline_mode = #tpu.pipeline_mode<synchronous>, transform_indices = @transform_2, window_bounds = array<i64: 40, 4>}]} {
    %c0 = arith.constant 0 : index
    %c0_0 = arith.constant 0 : index
    %0 = vector.load %arg1[%c0, %c0_0] : memref<40x8xf32, #tpu.memory_space<vmem>>, vector<40x8xf32>
    %1 = vector.extract_strided_slice %0 {offsets = [0, 2], sizes = [40, 2], strides = [1, 1]} : vector<40x8xf32> to vector<40x2xf32>
    %2 = vector.extract_strided_slice %0 {offsets = [0, 4], sizes = [40, 1], strides = [1, 1]} : vector<40x8xf32> to vector<40x1xf32>
    %c296 = arith.constant 296 : index
    %c0_1 = arith.constant 0 : index
    %3 = vector.load %arg2[%c296, %c0_1] : memref<304x64xf32, #tpu.memory_space<vmem>>, vector<8x64xf32>
    %c0_2 = arith.constant 0 : index
    %c0_3 = arith.constant 0 : index
    %4 = vector.load %arg2[%c0_2, %c0_3] : memref<304x64xf32, #tpu.memory_space<vmem>>, vector<8x32xf32>
    %5 = vector.extract_strided_slice %3 {offsets = [0, 0], sizes = [1, 32], strides = [1, 1]} : vector<8x64xf32> to vector<1x32xf32>
    %cst = arith.constant dense<0.000000e+00> : vector<40x32xf32>
    %6 = tpu.matmul %0, %4, %cst {dimension_numbers = #tpu.dot_dimension_numbers<[1], [0], [0], [1], [0, 0, 1, 1], [], []>} : vector<40x8xf32>, vector<8x32xf32>, vector<40x32xf32> -> vector<40x32xf32>
    %7 = vector.broadcast %5 : vector<1x32xf32> to vector<40x32xf32>
    %8 = arith.addf %6, %7 : vector<40x32xf32>
    %9 = vector.broadcast %2 : vector<40x1xf32> to vector<40x32xf32>
    %10 = arith.mulf %8, %9 : vector<40x32xf32>
    %cst_4 = arith.constant 0.000000e+00 : f32
    %11 = vector.broadcast %cst_4 : f32 to vector<40x32xf32>
    %12 = vector.extract_strided_slice %10 {offsets = [39, 0], sizes = [1, 32], strides = [1, 1]} : vector<40x32xf32> to vector<1x32xf32>
    %13 = vector.extract_strided_slice %10 {offsets = [0, 0], sizes = [39, 32], strides = [1, 1]} : vector<40x32xf32> to vector<39x32xf32>
    %14 = tpu.concatenate %12, %13 in 0 : vector<1x32xf32>, vector<39x32xf32> -> vector<40x32xf32>
    %15 = vector.extract_strided_slice %10 {offsets = [1, 0], sizes = [39, 32], strides = [1, 1]} : vector<40x32xf32> to vector<39x32xf32>
    %16 = vector.extract_strided_slice %10 {offsets = [0, 0], sizes = [1, 32], strides = [1, 1]} : vector<40x32xf32> to vector<1x32xf32>
    %17 = tpu.concatenate %15, %16 in 0 : vector<39x32xf32>, vector<1x32xf32> -> vector<40x32xf32>
    %18 = tpu.concatenate %14, %10, %17 in 1 : vector<40x32xf32>, vector<40x32xf32>, vector<40x32xf32> -> vector<40x96xf32>
    %c8 = arith.constant 8 : index
    %c0_5 = arith.constant 0 : index
    %19 = vector.load %arg2[%c8, %c0_5] : memref<304x64xf32, #tpu.memory_space<vmem>>, vector<96x64xf32>
    %20 = vector.extract_strided_slice %3 {offsets = [1, 0], sizes = [1, 64], strides = [1, 1]} : vector<8x64xf32> to vector<1x64xf32>
    %cst_6 = arith.constant dense<0.000000e+00> : vector<40x64xf32>
    %21 = tpu.matmul %18, %19, %cst_6 {dimension_numbers = #tpu.dot_dimension_numbers<[1], [0], [0], [1], [0, 0, 1, 1], [], []>} : vector<40x96xf32>, vector<96x64xf32>, vector<40x64xf32> -> vector<40x64xf32>
    %22 = vector.broadcast %20 : vector<1x64xf32> to vector<40x64xf32>
    %23 = arith.addf %21, %22 : vector<40x64xf32>
    %24 = vector.extract_strided_slice %23 {offsets = [0, 0], sizes = [40, 32], strides = [1, 1]} : vector<40x64xf32> to vector<40x32xf32>
    %25 = math.tanh %24 : vector<40x32xf32>
    %26 = vector.extract_strided_slice %23 {offsets = [0, 32], sizes = [40, 32], strides = [1, 1]} : vector<40x64xf32> to vector<40x32xf32>
    %cst_7 = arith.constant 0.000000e+00 : f32
    %27 = vector.broadcast %cst_7 : f32 to vector<40x32xf32>
    %28 = arith.subf %27, %26 : vector<40x32xf32>
    %29 = math.exp %28 : vector<40x32xf32>
    %cst_8 = arith.constant 1.000000e+00 : f32
    %30 = vector.broadcast %cst_8 : f32 to vector<40x32xf32>
    %31 = arith.addf %30, %29 : vector<40x32xf32>
    %cst_9 = arith.constant 1.000000e+00 : f32
    %32 = vector.broadcast %cst_9 : f32 to vector<40x32xf32>
    %33 = arith.divf %32, %31 : vector<40x32xf32>
    %34 = arith.mulf %25, %33 : vector<40x32xf32>
    %35 = vector.extract_strided_slice %3 {offsets = [3, 0], sizes = [1, 64], strides = [1, 1]} : vector<8x64xf32> to vector<1x64xf32>
    %c200 = arith.constant 200 : index
    %c0_10 = arith.constant 0 : index
    %36 = vector.load %arg2[%c200, %c0_10] : memref<304x64xf32, #tpu.memory_space<vmem>>, vector<32x64xf32>
    %cst_11 = arith.constant dense<0.000000e+00> : vector<40x64xf32>
    %37 = tpu.matmul %34, %36, %cst_11 {dimension_numbers = #tpu.dot_dimension_numbers<[1], [0], [0], [1], [0, 0, 1, 1], [], []>} : vector<40x32xf32>, vector<32x64xf32>, vector<40x64xf32> -> vector<40x64xf32>
    %38 = vector.broadcast %35 : vector<1x64xf32> to vector<40x64xf32>
    %39 = arith.addf %37, %38 : vector<40x64xf32>
    %40 = vector.extract_strided_slice %39 {offsets = [0, 0], sizes = [40, 32], strides = [1, 1]} : vector<40x64xf32> to vector<40x32xf32>
    %41 = arith.addf %10, %40 : vector<40x32xf32>
    %42 = vector.broadcast %2 : vector<40x1xf32> to vector<40x32xf32>
    %43 = arith.mulf %41, %42 : vector<40x32xf32>
    %44 = vector.extract_strided_slice %39 {offsets = [0, 32], sizes = [40, 32], strides = [1, 1]} : vector<40x64xf32> to vector<40x32xf32>
    %45 = arith.addf %11, %44 : vector<40x32xf32>
    %46 = vector.extract_strided_slice %43 {offsets = [38, 0], sizes = [2, 32], strides = [1, 1]} : vector<40x32xf32> to vector<2x32xf32>
    %47 = vector.extract_strided_slice %43 {offsets = [0, 0], sizes = [38, 32], strides = [1, 1]} : vector<40x32xf32> to vector<38x32xf32>
    %48 = tpu.concatenate %46, %47 in 0 : vector<2x32xf32>, vector<38x32xf32> -> vector<40x32xf32>
    %49 = vector.extract_strided_slice %43 {offsets = [2, 0], sizes = [38, 32], strides = [1, 1]} : vector<40x32xf32> to vector<38x32xf32>
    %50 = vector.extract_strided_slice %43 {offsets = [0, 0], sizes = [2, 32], strides = [1, 1]} : vector<40x32xf32> to vector<2x32xf32>
    %51 = tpu.concatenate %49, %50 in 0 : vector<38x32xf32>, vector<2x32xf32> -> vector<40x32xf32>
    %52 = tpu.concatenate %48, %43, %51 in 1 : vector<40x32xf32>, vector<40x32xf32>, vector<40x32xf32> -> vector<40x96xf32>
    %c104 = arith.constant 104 : index
    %c0_12 = arith.constant 0 : index
    %53 = vector.load %arg2[%c104, %c0_12] : memref<304x64xf32, #tpu.memory_space<vmem>>, vector<96x64xf32>
    %54 = vector.extract_strided_slice %3 {offsets = [2, 0], sizes = [1, 64], strides = [1, 1]} : vector<8x64xf32> to vector<1x64xf32>
    %cst_13 = arith.constant dense<0.000000e+00> : vector<40x64xf32>
    %55 = tpu.matmul %52, %53, %cst_13 {dimension_numbers = #tpu.dot_dimension_numbers<[1], [0], [0], [1], [0, 0, 1, 1], [], []>} : vector<40x96xf32>, vector<96x64xf32>, vector<40x64xf32> -> vector<40x64xf32>
    %56 = vector.broadcast %54 : vector<1x64xf32> to vector<40x64xf32>
    %57 = arith.addf %55, %56 : vector<40x64xf32>
    %58 = vector.extract_strided_slice %57 {offsets = [0, 0], sizes = [40, 32], strides = [1, 1]} : vector<40x64xf32> to vector<40x32xf32>
    %59 = math.tanh %58 : vector<40x32xf32>
    %60 = vector.extract_strided_slice %57 {offsets = [0, 32], sizes = [40, 32], strides = [1, 1]} : vector<40x64xf32> to vector<40x32xf32>
    %cst_14 = arith.constant 0.000000e+00 : f32
    %61 = vector.broadcast %cst_14 : f32 to vector<40x32xf32>
    %62 = arith.subf %61, %60 : vector<40x32xf32>
    %63 = math.exp %62 : vector<40x32xf32>
    %cst_15 = arith.constant 1.000000e+00 : f32
    %64 = vector.broadcast %cst_15 : f32 to vector<40x32xf32>
    %65 = arith.addf %64, %63 : vector<40x32xf32>
    %cst_16 = arith.constant 1.000000e+00 : f32
    %66 = vector.broadcast %cst_16 : f32 to vector<40x32xf32>
    %67 = arith.divf %66, %65 : vector<40x32xf32>
    %68 = arith.mulf %59, %67 : vector<40x32xf32>
    %69 = vector.extract_strided_slice %3 {offsets = [4, 0], sizes = [1, 64], strides = [1, 1]} : vector<8x64xf32> to vector<1x64xf32>
    %c232 = arith.constant 232 : index
    %c0_17 = arith.constant 0 : index
    %70 = vector.load %arg2[%c232, %c0_17] : memref<304x64xf32, #tpu.memory_space<vmem>>, vector<32x32xf32>
    %cst_18 = arith.constant dense<0.000000e+00> : vector<40x32xf32>
    %71 = tpu.matmul %68, %70, %cst_18 {dimension_numbers = #tpu.dot_dimension_numbers<[1], [0], [0], [1], [0, 0, 1, 1], [], []>} : vector<40x32xf32>, vector<32x32xf32>, vector<40x32xf32> -> vector<40x32xf32>
    %72 = vector.extract_strided_slice %69 {offsets = [0, 0], sizes = [1, 32], strides = [1, 1]} : vector<1x64xf32> to vector<1x32xf32>
    %73 = vector.broadcast %72 : vector<1x32xf32> to vector<40x32xf32>
    %74 = arith.addf %71, %73 : vector<40x32xf32>
    %75 = arith.addf %45, %74 : vector<40x32xf32>
    %76 = vector.broadcast %2 : vector<40x1xf32> to vector<40x32xf32>
    %77 = arith.mulf %75, %76 : vector<40x32xf32>
    %c264 = arith.constant 264 : index
    %c0_19 = arith.constant 0 : index
    %78 = vector.load %arg2[%c264, %c0_19] : memref<304x64xf32, #tpu.memory_space<vmem>>, vector<32x4xf32>
    %79 = vector.extract_strided_slice %3 {offsets = [5, 0], sizes = [1, 4], strides = [1, 1]} : vector<8x64xf32> to vector<1x4xf32>
    %cst_20 = arith.constant dense<0.000000e+00> : vector<40x4xf32>
    %80 = tpu.matmul %77, %78, %cst_20 {dimension_numbers = #tpu.dot_dimension_numbers<[1], [0], [0], [1], [0, 0, 1, 1], [], []>} : vector<40x32xf32>, vector<32x4xf32>, vector<40x4xf32> -> vector<40x4xf32>
    %81 = vector.broadcast %79 : vector<1x4xf32> to vector<40x4xf32>
    %82 = arith.addf %80, %81 : vector<40x4xf32>
    %83 = vector.broadcast %2 : vector<40x1xf32> to vector<40x4xf32>
    %84 = arith.mulf %82, %83 : vector<40x4xf32>
    %85 = vector.extract_strided_slice %84 {offsets = [0, 0], sizes = [40, 2], strides = [1, 1]} : vector<40x4xf32> to vector<40x2xf32>
    %86 = vector.extract_strided_slice %84 {offsets = [0, 2], sizes = [40, 2], strides = [1, 1]} : vector<40x4xf32> to vector<40x2xf32>
    %87 = math.exp %86 : vector<40x2xf32>
    %88 = arith.mulf %1, %87 : vector<40x2xf32>
    %89 = vector.broadcast %2 : vector<40x1xf32> to vector<40x2xf32>
    %90 = arith.mulf %88, %89 : vector<40x2xf32>
    %91 = arith.addf %85, %90 : vector<40x2xf32>
    %cst_21 = arith.constant dense<0.000000e+00> : vector<40xf32>
    %92 = vector.multi_reduction <add>, %86, %cst_21 [1] : vector<40x2xf32> to vector<40xf32>
    %93 = vector.shape_cast %92 : vector<40xf32> to vector<40x1xf32>
    %cst_22 = arith.constant 0.000000e+00 : f32
    %94 = vector.broadcast %cst_22 : f32 to vector<40x1xf32>
    %95 = tpu.concatenate %91, %93, %94 in 1 : vector<40x2xf32>, vector<40x1xf32>, vector<40x1xf32> -> vector<40x4xf32>
    %c0_23 = arith.constant 0 : index
    %c0_24 = arith.constant 0 : index
    %96 = vector.load %arg3[%c0_23, %c0_24] : memref<40x4xf32, #tpu.memory_space<vmem>>, vector<40x4xf32>
    tpu.vector_store %arg3[%c0_23, %c0_24], %95 {strides = array<i32>} : memref<40x4xf32, #tpu.memory_space<vmem>>, vector<40x4xf32>,
    return
  }
  func.func @transform_0(%arg0: i32) -> (i32, i32) {
    %c0_i32 = arith.constant 0 : i32
    %c0_i32_0 = arith.constant 0 : i32
    %c0_i32_1 = arith.constant 0 : i32
    return %c0_i32, %c0_i32_0 : i32, i32
  }
  func.func @transform_1(%arg0: i32) -> (i32, i32) {
    %c0_i32 = arith.constant 0 : i32
    %c0_i32_0 = arith.constant 0 : i32
    %c0_i32_1 = arith.constant 0 : i32
    return %c0_i32, %c0_i32_0 : i32, i32
  }
  func.func @transform_2(%arg0: i32) -> (i32, i32) {
    %c0_i32 = arith.constant 0 : i32
    %c0_i32_0 = arith.constant 0 : i32
    %c0_i32_1 = arith.constant 0 : i32
    return %c0_i32, %c0_i32_0 : i32, i32
  }
}

</mosaic_0001>

<bundles_post_ra>
// kernel: coupling_forward.1
= control target key start
LH: loop header
LB: loop body
LE: loop exit
PB: predicated region body
PF: predicated region fallthrough
CT: control target
= control target key end

     0   :  { %vm22_vm0 = vcmask 64512   ;;  %v1575_v0 = vmov 0.0   ;;  %vm1576_vm1 = vmmov 0   ;;  %v1577_v3 = vmov 4   ;;  %s1579_s19 = smov 32   ;;  %s1580_s20 = smov 64   ;;  %s2104_s1 = inlined_call_operand.vmem [shape: f32[304,64], index: 1, kind: input, shape index: {}]   ;;  %s2105_s0 = inlined_call_operand.vmem [shape: f32[40,8], index: 0, kind: input, shape index: {}]   ;;  %s2106_s2 = inlined_call_operand.vmem [shape: f32[40,4], index: 2, kind: output, shape index: {}]  }
   0x1   :  { %1268 = vmatprep.subr.mxu0 %v1575_v0  ;;  %v17_v1 = vld [vmem:[%s2104_s1] sm:$0xff]  ;;  %1270 = vmatprep.mubr.msk.f32.mxu0 %vm1576_vm1, %v1575_v0  ;;  %v12_v4 = vld [vmem:[%s2105_s0 + $0x8] sm:$0xff]  ;;  %v13_v5 = vld [vmem:[%s2105_s0 + $0x10] sm:$0xff]  ;;  %v1578_v11 = vmov 0.0|0.0   ;;  %v18_v21 = vlaneseq  ;;  %vm175_vm2 = vcmask 1046528   ;;  %vm219_vm3 = vcmask 261120  }
   0x2   :  { %v11_v2 = vld [vmem:[%s2105_s0] sm:$0xff]  ;;  %1269 = vmatpush3.msra.mxu0 %v17_v1  ;;  %1498 = vset.pattern.permute.xlu0 %v1577_v3  ;;  %v14_v6 = vld [vmem:[%s2105_s0 + $0x18] sm:$0xff]  ;;  %v231_v8 = vld [vmem:[%s2104_s1 + $0x8] sm:$0xff]  ;;  %vm160_vm4 = vcmask 1040384   ;;  %vm225_vm5 = vcmask 523264   ;;  %vm247_vm6 = vcmask 785408  }
   0x3   :  { %1271 = vmatmul.mubr.msk.f32.vlgmr.msra.gmra.mrb[0].mxu0 %vm22_vm0, %v11_v2  ;;  %129 = vperm.xlu0 %1498, %v11_v2   ;;  %v15_v7 = vld [vmem:[%s2105_s0 + $0x20] sm:$0xff]  ;;  %v232_v9 = vld [vmem:[%s2104_s1 + $0x10] sm:$0xff]  ;;  %v233_v10 = vld [vmem:[%s2104_s1 + $0x18] sm:$0xff]  ;;  %v1666_v22 = vshrl.u32 %v18_v21, 7  ;;  %s1581_s29 = smov 96   ;;  %vm563_vm7 = vcmask 1045504  }
   0x4   :  { %1273 = vmatprep.mubr.msk.f32.mxu0 %vm1576_vm1, %v1575_v0  ;;  %1499 = vset.pattern.permute.xlu1 %v1577_v3  ;;  %v1433_v12 = vpack.c.bf16 %v232_v9, %v231_v8  ;;  %v234_v13 = vld [vmem:[%s2104_s1 + $0x20] sm:$0xff]  ;;  %v235_v15 = vld [vmem:[%s2104_s1 + $0x28] sm:$0xff]  ;;  %v236_v16 = vld [vmem:[%s2104_s1 + $0x30] sm:$0xff]  ;;  %vm548_vm8 = vcmask 1041408   ;;  %vm1134_vm9 = vcmask 15360   ;;  %vm1155_vm10 = vcmask 23552  }
   0x5   :  { %137 = vperm.xlu1 %1499, %v13_v5   ;;  %1309 = vmatprep.mubr.msk.f32.mxu1 %vm1576_vm1, %v1575_v0  ;;  %v1436_v14 = vpack.c.bf16 %v234_v13, %v233_v10  ;;  %v1439_v17 = vpack.c.bf16 %v236_v16, %v235_v15  ;;  %v237_v18 = vld [vmem:[%s2104_s1 + $0x38] sm:$0xff]  ;;  %v238_v19 = vld [vmem:[%s2104_s1 + $0x40] sm:$0xff]  ;;  %v239_v23 = vld [vmem:[%s2104_s1 + $0x48] sm:$0xff]  ;;  %v20_v26 = vsub.s32 0, %v1666_v22  ;;  %vm1161_vm11 = vcmask 31744  }
   0x6   :  { %1432 = vmatprep.subr.bf16.mxu1 %v1578_v11  ;;  %1450 = vmatprep.subr.bf16.mxu0 %v1578_v11  ;;  %v1442_v20 = vpack.c.bf16 %v238_v19, %v237_v18  ;;  %v240_v24 = vld [vmem:[%s2104_s1 + $0x50] sm:$0xff]  ;;  %v1678_v27 = vld [vmem:[%s2104_s1 + $0x128] sm:$0xff]  ;;  %v241_v28 = vld [vmem:[%s2104_s1 + $0x58] sm:$0xff] }
   0x7   :  { %1274 = vmatmul.mubr.msk.f32.gmra.mrb[2].mxu0 %vm22_vm0, %v12_v4  ;;  %133 = vperm.xlu0 %1498, %v12_v4   ;;  %v1445_v25 = vpack.c.bf16 %v240_v24, %v239_v23  ;;  %v242_v29 = vld [vmem:[%s2104_s1 + $0x60] sm:$0xff]  ;;  %v21_v31 = vrot.slane %v1678_v27, %v20_v26 }
   0x8   :  { %1276 = vmatprep.mubr.msk.f32.mxu0 %vm1576_vm1, %v1575_v0  ;;  %1434 = vmatpush3.bf16.msra.mxu1 %v1433_v12  ;;  %v1448_v30 = vpack.c.bf16 %v242_v29, %v241_v28 }
   0x9   :  { %141 = vperm.xlu1 %1499, %v14_v6   ;;  %1435 = vmatprep.subr.bf16.mxu1 %v1578_v11 }
   0xb   :  { %1277 = vmatmul.mubr.msk.f32.gmra.mrb[4].mxu0 %vm22_vm0, %v13_v5  ;;  %145 = vperm.xlu0 %1498, %v15_v7  }
   0xc   :  { %1279 = vmatprep.mubr.msk.f32.mxu0 %vm1576_vm1, %v1575_v0  ;;  %1437 = vmatpush3.bf16.msra.mxu1 %v1436_v14 }
   0xd   :  { %1438 = vmatprep.subr.bf16.mxu1 %v1578_v11 }
   0xf   :  { %1280 = vmatmul.mubr.msk.f32.gmra.mrb[6].mxu0 %vm22_vm0, %v14_v6 }
  0x10   :  { %1282 = vmatprep.mubr.msk.f32.mxu0 %vm1576_vm1, %v1575_v0  ;;  %1440 = vmatpush3.bf16.msra.mxu1 %v1439_v17 }
  0x11   :  { %1441 = vmatprep.subr.bf16.mxu1 %v1578_v11 }
  0x13   :  { %1283 = vmatmul.mubr.msk.f32.gmra.mrb[8].mxu0 %vm22_vm0, %v15_v7 }
  0x14   :  { %1332 = vmatprep.mubr.msk.f32.mxu0 %vm1576_vm1, %v1575_v0  ;;  %1443 = vmatpush3.bf16.msra.mxu1 %v1442_v20 }
  0x15   :  { %1444 = vmatprep.subr.bf16.mxu1 %v1578_v11 }
  0x18   :  { %1446 = vmatpush3.bf16.msra.mxu1 %v1445_v25 }
  0x19   :  { %1447 = vmatprep.subr.bf16.mxu1 %v1578_v11 }
  0x1c   :  { %1449 = vmatpush3.bf16.msra.mxu1 %v1448_v30 }
  0x1d   :  { %1486 = vmatprep.subr.bf16.mxu1 %v1578_v11 }
  0x82   :  { %v1689_v32 = vpop.permute.xlu0 %129 }
  0x84   :  { %v1701_v42 = vpop.permute.xlu1 %137 }
  0x86   :  { %v1696_v40 = vpop.permute.xlu0 %133 }
  0x88   :  { %v1715_v54 = vpop.permute.xlu1 %141 }
  0x8a   :  { %v1725_v61 = vpop.permute.xlu0 %145 }
  0xd6   :  { %v104_v33 = vpop.f32.mrb[0].mxu0 }
  0xd7   :  { %v105_v34 = vadd.f32 %v104_v33, %v21_v31  ;;  %v1272_v35 = vpop.f32.mrb[1].mxu0 }
  0xd9   :  { %v1692_v36 = vmul.f32 %v1689_v32, %v105_v34 }
  0xda   :  { %v109_v37 = vpop.f32.mrb[2].mxu0 }
  0xdb   :  { %v110_v38 = vadd.f32 %v109_v37, %v21_v31  ;;  %188 = vrot.lane.b32.xlu1 %v1692_v36, %s1579_s19  ;;  %v1275_v39 = vpop.f32.mrb[3].mxu0  ;;  %v176_v46 = vrot.slane %v1692_v36, 1  ;;  %v161_v6 = vrot.slane %v1692_v36, 7 }
  0xdc   :  { %v413_v39 = vld [vmem:[%s2104_s1 + $0xc8] sm:$0xff] }
  0xdd   :  { %v1699_v41 = vmul.f32 %v1696_v40, %v110_v38 }
  0xde   :  { %v114_v43 = vpop.f32.mrb[4].mxu0 }
  0xdf   :  { %v115_v44 = vadd.f32 %v114_v43, %v21_v31  ;;  %190 = vrot.lane.b32.xlu1 %v1699_v41, %s1579_s19  ;;  %v1278_v45 = vpop.f32.mrb[5].mxu0  ;;  %v177_v47 = vrot.slane %v1699_v41, 1  ;;  %v162_v9 = vrot.slane %v1699_v41, 7  ;;  %v414_v43 = vld [vmem:[%s2104_s1 + $0xd0] sm:$0xff] }
  0xe0   :  { %v1451_v45 = vpack.c.bf16 %v414_v43, %v413_v39 }
  0xe1   :  { %v1708_v48 = vmul.f32 %v1701_v42, %v115_v44  ;;  %v178_v49 = vsel %vm175_vm2, %v176_v46, %v177_v47  ;;  %v163_v15 = vsel %vm160_vm4, %v161_v6, %v162_v9  ;;  %v415_v44 = vld [vmem:[%s2104_s1 + $0xd8] sm:$0xff] }
  0xe2   :  { %204 = vrot.lane.b32.xlu0 %v178_v49, %s1580_s20  ;;  %v119_v50 = vpop.f32.mrb[6].mxu0  ;;  %1452 = vmatpush3.bf16.msra.mxu0 %v1451_v45  ;;  %v245_v49 = vsub.s32 1, %v1666_v22 }
  0xe3   :  { %v120_v51 = vadd.f32 %v119_v50, %v21_v31  ;;  %192 = vrot.lane.b32.xlu1 %v1708_v48, %s1579_s19  ;;  %v1281_v52 = vpop.f32.mrb[7].mxu0  ;;  %v179_v53 = vrot.slane %v1708_v48, 1  ;;  %v164_v16 = vrot.slane %v1708_v48, 7  ;;  %1453 = vmatprep.subr.bf16.mxu0 %v1578_v11 }
  0xe4   :  { %v246_v50 = vrot.slane %v1678_v27, %v245_v49 }
  0xe5   :  { %v1718_v55 = vmul.f32 %v1715_v54, %v120_v51  ;;  %v180_v56 = vsel %vm175_vm2, %v177_v47, %v179_v53  ;;  %v165_v20 = vsel %vm160_vm4, %v162_v9, %v164_v16 }
  0xe6   :  { %206 = vrot.lane.b32.xlu0 %v180_v56, %s1580_s20  ;;  %v124_v57 = vpop.f32.mrb[8].mxu0 }
  0xe7   :  { %v125_v58 = vadd.f32 %v124_v57, %v21_v31  ;;  %194 = vrot.lane.b32.xlu1 %v1718_v55, %s1579_s19  ;;  %v1284_v59 = vpop.f32.mrb[9].mxu0  ;;  %v181_v60 = vrot.slane %v1718_v55, 1  ;;  %v166_v23 = vrot.slane %v1718_v55, 7 }
  0xe9   :  { %v1728_v62 = vmul.f32 %v1725_v61, %v125_v58  ;;  %v182_v63 = vsel %vm175_vm2, %v179_v53, %v181_v60  ;;  %v167_v28 = vsel %vm160_vm4, %v164_v16, %v166_v23 }
  0xea   :  { %208 = vrot.lane.b32.xlu0 %v182_v63, %s1580_s20 }
  0xeb   :  { %196 = vrot.lane.b32.xlu1 %v1728_v62, %s1579_s19  ;;  %v183_v1 = vrot.slane %v1728_v62, 1  ;;  %v154_v5 = vrot.slane %v1728_v62, 7 }
  0xed   :  { %v184_v2 = vsel %vm175_vm2, %v181_v60, %v183_v1  ;;  %v187_v3 = vsel %vm175_vm2, %v183_v1, %v176_v46  ;;  %v174_v8 = vsel %vm160_vm4, %v154_v5, %v161_v6  ;;  %v168_v34 = vsel %vm160_vm4, %v166_v23, %v154_v5  ;;  %v416_v46 = vld [vmem:[%s2104_s1 + $0xe0] sm:$0xff] }
  0xee   :  { %210 = vrot.lane.b32.xlu0 %v184_v2, %s1580_s20  ;;  %v1454_v47 = vpack.c.bf16 %v416_v46, %v415_v44 }
  0xf0   :  { %1455 = vmatpush3.bf16.msra.mxu0 %v1454_v47 }
  0xf1   :  { %1456 = vmatprep.subr.bf16.mxu0 %v1578_v11 }
  0xf2   :  { %212 = vrot.lane.b32.xlu0 %v187_v3, %s1580_s20 }
 0x14d   :  { %v189_v4 = vpop.permute.xlu1 %188 }
 0x14e   :  { %v220_v10 = vsel %vm219_vm3, %v174_v8, %v189_v4 }
 0x151   :  { %v191_v7 = vpop.permute.xlu1 %190 }
 0x152   :  { %v221_v17 = vsel %vm219_vm3, %v163_v15, %v191_v7 }
 0x154   :  { %v205_v12 = vpop.permute.xlu0 %204 }
 0x155   :  { %v226_v13 = vsel %vm225_vm5, %v220_v10, %v205_v12  ;;  %v193_v14 = vpop.permute.xlu1 %192 }
 0x156   :  { %1310 = vmatmul.mubr.msk.f32.vlgmr.msra.gmra.mrb[0].mxu1 %vm247_vm6, %v226_v13  ;;  %v222_v24 = vsel %vm219_vm3, %v165_v20, %v193_v14 }
 0x157   :  { %1312 = vmatprep.mubr.msk.f32.mxu1 %vm1576_vm1, %v1575_v0 }
 0x158   :  { %v207_v18 = vpop.permute.xlu0 %206 }
 0x159   :  { %v227_v19 = vsel %vm225_vm5, %v221_v17, %v207_v18  ;;  %v195_v21 = vpop.permute.xlu1 %194 }
 0x15a   :  { %1313 = vmatmul.mubr.msk.f32.gmra.mrb[2].mxu1 %vm247_vm6, %v227_v19  ;;  %v223_v29 = vsel %vm219_vm3, %v167_v28, %v195_v21 }
 0x15b   :  { %1315 = vmatprep.mubr.msk.f32.mxu1 %vm1576_vm1, %v1575_v0 }
 0x15c   :  { %v209_v25 = vpop.permute.xlu0 %208 }
 0x15d   :  { %v228_v26 = vsel %vm225_vm5, %v222_v24, %v209_v25  ;;  %v197_v31 = vpop.permute.xlu1 %196 }
 0x15e   :  { %1316 = vmatmul.mubr.msk.f32.gmra.mrb[4].mxu1 %vm247_vm6, %v228_v26  ;;  %v224_v35 = vsel %vm219_vm3, %v168_v34, %v197_v31 }
 0x15f   :  { %1318 = vmatprep.mubr.msk.f32.mxu1 %vm1576_vm1, %v1575_v0 }
 0x160   :  { %v211_v30 = vpop.permute.xlu0 %210 }
 0x161   :  { %v229_v33 = vsel %vm225_vm5, %v223_v29, %v211_v30 }
 0x162   :  { %1319 = vmatmul.mubr.msk.f32.gmra.mrb[6].mxu1 %vm247_vm6, %v229_v33 }
 0x163   :  { %1321 = vmatprep.mubr.msk.f32.mxu1 %vm1576_vm1, %v1575_v0 }
 0x164   :  { %v213_v37 = vpop.permute.xlu0 %212 }
 0x165   :  { %v230_v38 = vsel %vm225_vm5, %v224_v35, %v213_v37 }
 0x166   :  { %1322 = vmatmul.mubr.msk.f32.gmra.mrb[8].mxu1 %vm247_vm6, %v230_v38 }
 0x167   :  { %1400 = vmatprep.mubr.msk.f32.mxu1 %vm1576_vm1, %v1575_v0 }
 0x229   :  { %v329_v51 = vpop.f32.mrb[0].mxu1 }
 0x22a   :  { %v330_v52 = vadd.f32 %v329_v51, %v246_v50  ;;  %v1311_v53 = vpop.f32.mrb[1].mxu1 }
 0x22c   :  { %v358_v56 = vsub.f32 0.0, %v330_v52 }
 0x22d   :  { %v334_v57 = vpop.f32.mrb[2].mxu1 }
 0x22e   :  { %v363_v58 = vmul.f32 1.442695, %v358_v56  ;;  %v335_v59 = vadd.f32 %v334_v57, %v246_v50  ;;  %v1314_v60 = vpop.f32.mrb[3].mxu1 }
 0x22f   :  { %v619_v60 = vld [vmem:[%s2104_s1 + $0x78] sm:$0xff] }
 0x230   :  { %1500 = vpow2.f32 %v363_v58  ;;  %v359_v63 = vsub.f32 0.0, %v335_v59  ;;  %v617_v58 = vld [vmem:[%s2104_s1 + $0x68] sm:$0xff] }
 0x231   :  { %v339_v1 = vpop.f32.mrb[4].mxu1 }
 0x232   :  { %v365_v2 = vmul.f32 1.442695, %v359_v63  ;;  %v340_v3 = vadd.f32 %v339_v1, %v246_v50  ;;  %v1317_v4 = vpop.f32.mrb[5].mxu1  ;;  %v620_v1 = vld [vmem:[%s2104_s1 + $0x80] sm:$0xff] }
 0x233   :  { %v622_v4 = vld [vmem:[%s2104_s1 + $0x90] sm:$0xff] }
 0x234   :  { %1502 = vpow2.f32 %v365_v2  ;;  %v360_v5 = vsub.f32 0.0, %v340_v3  ;;  %v1460_v2 = vpack.c.bf16 %v620_v1, %v619_v60 }
 0x235   :  { %v344_v6 = vpop.f32.mrb[6].mxu1 }
 0x236   :  { %v367_v7 = vmul.f32 1.442695, %v360_v5  ;;  %v345_v8 = vadd.f32 %v344_v6, %v246_v50  ;;  %v1320_v9 = vpop.f32.mrb[7].mxu1  ;;  %v623_v6 = vld [vmem:[%s2104_s1 + $0x98] sm:$0xff] }
 0x237   :  { %v419_v9 = vsub.s32 3, %v1666_v22 }
 0x238   :  { %1504 = vpow2.f32 %v367_v7  ;;  %v361_v10 = vsub.f32 0.0, %v345_v8  ;;  %v624_v7 = vld [vmem:[%s2104_s1 + $0xa0] sm:$0xff] }
 0x239   :  { %v349_v12 = vpop.f32.mrb[8].mxu1 }
 0x23a   :  { %v1501_v13 = vpop.eup %1500  ;;  %v369_v14 = vmul.f32 1.442695, %v361_v10  ;;  %v350_v15 = vadd.f32 %v349_v12, %v246_v50  ;;  %v1323_v16 = vpop.f32.mrb[9].mxu1  ;;  %v625_v10 = vld [vmem:[%s2104_s1 + $0xa8] sm:$0xff]  ;;  %v626_v12 = vld [vmem:[%s2104_s1 + $0xb0] sm:$0xff] }
 0x23b   :  { %v373_v17 = vadd.f32 1.0, %v1501_v13  ;;  %v1469_v13 = vpack.c.bf16 %v626_v12, %v625_v10  ;;  %v628_v16 = vld [vmem:[%s2104_s1 + $0xc0] sm:$0xff] }
 0x23c   :  { %1506 = vpow2.f32 %v369_v14  ;;  %v362_v18 = vsub.f32 0.0, %v350_v15  ;;  %v420_v14 = vrot.slane %v1678_v27, %v419_v9 }
 0x23d   :  { %1508 = vrcp.f32 %v373_v17 }
 0x23e   :  { %v1503_v19 = vpop.eup %1502  ;;  %v371_v20 = vmul.f32 1.442695, %v362_v18 }
 0x23f   :  { %v374_v21 = vadd.f32 1.0, %v1503_v19 }
 0x240   :  { %1510 = vpow2.f32 %v371_v20 }
 0x241   :  { %1512 = vrcp.f32 %v374_v21 }
 0x242   :  { %v1505_v23 = vpop.eup %1504 }
 0x243   :  { %v375_v24 = vadd.f32 1.0, %v1505_v23 }
 0x245   :  { %1514 = vrcp.f32 %v375_v24 }
 0x246   :  { %v1507_v25 = vpop.eup %1506 }
 0x247   :  { %v1509_v26 = vpop.eup %1508  ;;  %v376_v28 = vadd.f32 1.0, %v1507_v25 }
 0x248   :  { %393 = vrot.lane.b32.xlu1 %v1509_v26, %s1581_s29 }
 0x249   :  { %1516 = vrcp.f32 %v376_v28 }
 0x24a   :  { %v1511_v29 = vpop.eup %1510 }
 0x24b   :  { %v1513_v30 = vpop.eup %1512  ;;  %v377_v31 = vadd.f32 1.0, %v1511_v29 }
 0x24c   :  { %395 = vrot.lane.b32.xlu0 %v1513_v30, %s1581_s29 }
 0x24d   :  { %1518 = vrcp.f32 %v377_v31 }
 0x24e   :  { %1520 = vtanh.f32 %v330_v52 }
 0x24f   :  { %v1515_v33 = vpop.eup %1514  ;;  %1522 = vtanh.f32 %v335_v59  ;;  %v618_v59 = vld [vmem:[%s2104_s1 + $0x70] sm:$0xff] }
 0x250   :  { %397 = vrot.lane.b32.xlu1 %v1515_v33, %s1581_s29  ;;  %1524 = vtanh.f32 %v340_v3  ;;  %v1457_v63 = vpack.c.bf16 %v618_v59, %v617_v58  ;;  %v621_v3 = vld [vmem:[%s2104_s1 + $0x88] sm:$0xff] }
 0x251   :  { %1526 = vtanh.f32 %v345_v8  ;;  %v1463_v5 = vpack.c.bf16 %v622_v4, %v621_v3  ;;  %v1466_v8 = vpack.c.bf16 %v624_v7, %v623_v6 }
 0x252   :  { %1528 = vtanh.f32 %v350_v15  ;;  %v627_v15 = vld [vmem:[%s2104_s1 + $0xb8] sm:$0xff] }
 0x253   :  { %v1517_v34 = vpop.eup %1516  ;;  %v1472_v17 = vpack.c.bf16 %v628_v16, %v627_v15 }
 0x254   :  { %399 = vrot.lane.b32.xlu0 %v1517_v34, %s1581_s29 }
 0x257   :  { %v1519_v35 = vpop.eup %1518 }
 0x258   :  { %401 = vrot.lane.b32.xlu1 %v1519_v35, %s1581_s29  ;;  %v1521_v37 = vpop.eup %1520 }
 0x259   :  { %v1523_v43 = vpop.eup %1522 }
 0x25a   :  { %v1525_v46 = vpop.eup %1524 }
 0x25b   :  { %v1527_v50 = vpop.eup %1526 }
 0x25c   :  { %v1529_v53 = vpop.eup %1528 }
 0x2ba   :  { %v394_v38 = vpop.permute.xlu1 %393 }
 0x2bb   :  { %v408_v39 = vmul.f32 %v1521_v37, %v394_v38 }
 0x2bd   :  { %1333 = vmatmul.mubr.msk.f32.vlgmr.msra.gmra.mrb[10].mxu0 %vm219_vm3, %v408_v39 }
 0x2be   :  { %v396_v44 = vpop.permute.xlu0 %395  ;;  %1335 = vmatprep.mubr.msk.f32.mxu0 %vm1576_vm1, %v1575_v0  ;;  %1458 = vmatpush3.bf16.msra.mxu0 %v1457_v63 }
 0x2bf   :  { %v409_v45 = vmul.f32 %v1523_v43, %v396_v44  ;;  %1459 = vmatprep.subr.bf16.mxu0 %v1578_v11 }
 0x2c1   :  { %1336 = vmatmul.mubr.msk.f32.gmra.mrb[12].mxu0 %vm219_vm3, %v409_v45 }
 0x2c2   :  { %v398_v47 = vpop.permute.xlu1 %397  ;;  %1338 = vmatprep.mubr.msk.f32.mxu0 %vm1576_vm1, %v1575_v0  ;;  %1461 = vmatpush3.bf16.msra.mxu0 %v1460_v2 }
 0x2c3   :  { %v410_v49 = vmul.f32 %v1525_v46, %v398_v47  ;;  %1462 = vmatprep.subr.bf16.mxu0 %v1578_v11 }
 0x2c5   :  { %1339 = vmatmul.mubr.msk.f32.gmra.mrb[14].mxu0 %vm219_vm3, %v410_v49 }
 0x2c6   :  { %v400_v51 = vpop.permute.xlu0 %399  ;;  %1341 = vmatprep.mubr.msk.f32.mxu0 %vm1576_vm1, %v1575_v0  ;;  %1464 = vmatpush3.bf16.msra.mxu0 %v1463_v5 }
 0x2c7   :  { %v411_v52 = vmul.f32 %v1527_v50, %v400_v51  ;;  %1465 = vmatprep.subr.bf16.mxu0 %v1578_v11 }
 0x2c9   :  { %1342 = vmatmul.mubr.msk.f32.gmra.mrb[16].mxu0 %vm219_vm3, %v411_v52 }
 0x2ca   :  { %v402_v56 = vpop.permute.xlu1 %401  ;;  %1344 = vmatprep.mubr.msk.f32.mxu0 %vm1576_vm1, %v1575_v0  ;;  %1467 = vmatpush3.bf16.msra.mxu0 %v1466_v8 }
 0x2cb   :  { %v412_v57 = vmul.f32 %v1529_v53, %v402_v56  ;;  %1468 = vmatprep.subr.bf16.mxu0 %v1578_v11 }
 0x2cd   :  { %1345 = vmatmul.mubr.msk.f32.gmra.mrb[18].mxu0 %vm219_vm3, %v412_v57 }
 0x2ce   :  { %1371 = vmatprep.mubr.msk.f32.mxu0 %vm1576_vm1, %v1575_v0  ;;  %1470 = vmatpush3.bf16.msra.mxu0 %v1469_v13 }
 0x2cf   :  { %1471 = vmatprep.subr.bf16.mxu0 %v1578_v11 }
 0x2d2   :  { %1473 = vmatpush3.bf16.msra.mxu0 %v1472_v17 }
 0x2d3   :  { %1474 = vmatprep.subr.bf16.mxu0 %v1578_v11 }
 0x390   :  { %v502_v18 = vpop.f32.mrb[10].mxu0 }
 0x391   :  { %v1853_v19 = vadd.f32 %v502_v18, %v420_v14  ;;  %v1334_v20 = vpop.f32.mrb[11].mxu0 }
 0x393   :  { %v526_v21 = vadd.f32 %v1853_v19, %v1692_v36 }
 0x394   :  { %v507_v23 = vpop.f32.mrb[12].mxu0 }
 0x395   :  { %v1858_v24 = vadd.f32 %v507_v23, %v420_v14  ;;  %v1337_v25 = vpop.f32.mrb[13].mxu0  ;;  %v531_v26 = vmul.f32 %v526_v21, %v1689_v32 }
 0x397   :  { %v527_v28 = vadd.f32 %v1858_v24, %v1699_v41  ;;  %576 = vrot.lane.b32.xlu0 %v531_v26, %s1579_s19  ;;  %v564_v34 = vrot.slane %v531_v26, 2  ;;  %v549_v37 = vrot.slane %v531_v26, 6 }
 0x398   :  { %v512_v29 = vpop.f32.mrb[14].mxu0 }
 0x399   :  { %v1864_v30 = vadd.f32 %v512_v29, %v420_v14  ;;  %v1340_v31 = vpop.f32.mrb[15].mxu0  ;;  %v532_v33 = vmul.f32 %v527_v28, %v1696_v40 }
 0x39b   :  { %v528_v36 = vadd.f32 %v1864_v30, %v1708_v48  ;;  %578 = vrot.lane.b32.xlu0 %v532_v33, %s1579_s19  ;;  %v565_v35 = vrot.slane %v532_v33, 2  ;;  %v550_v38 = vrot.slane %v532_v33, 6 }
 0x39c   :  { %v517_v41 = vpop.f32.mrb[16].mxu0 }
 0x39d   :  { %v1870_v39 = vadd.f32 %v517_v41, %v420_v14  ;;  %v1343_v43 = vpop.f32.mrb[17].mxu0  ;;  %v566_v44 = vsel %vm563_vm7, %v564_v34, %v565_v35  ;;  %v533_v45 = vmul.f32 %v528_v36, %v1701_v42  ;;  %v551_v46 = vsel %vm548_vm8, %v549_v37, %v550_v38  ;;  %v799_v36 = vld [vmem:[%s2104_s1 + $0xf0] sm:$0xff] }
 0x39e   :  { %592 = vrot.lane.b32.xlu1 %v566_v44, %s1580_s20  ;;  %v631_v43 = vsub.s32 2, %v1666_v22 }
 0x39f   :  { %v529_v48 = vadd.f32 %v1870_v39, %v1718_v55  ;;  %580 = vrot.lane.b32.xlu0 %v533_v45, %s1579_s19  ;;  %v567_v47 = vrot.slane %v533_v45, 2  ;;  %v552_v49 = vrot.slane %v533_v45, 6 }
 0x3a0   :  { %v522_v50 = vpop.f32.mrb[18].mxu0  ;;  %v632_v44 = vrot.slane %v1678_v27, %v631_v43 }
 0x3a1   :  { %v1879_v51 = vadd.f32 %v522_v50, %v420_v14  ;;  %v1346_v52 = vpop.f32.mrb[19].mxu0  ;;  %v568_v53 = vsel %vm563_vm7, %v565_v35, %v567_v47  ;;  %v534_v56 = vmul.f32 %v529_v48, %v1715_v54  ;;  %v553_v57 = vsel %vm548_vm8, %v550_v38, %v552_v49  ;;  %v800_v35 = vld [vmem:[%s2104_s1 + $0xf8] sm:$0xff]  ;;  %v801_v38 = vld [vmem:[%s2104_s1 + $0x100] sm:$0xff] }
 0x3a2   :  { %594 = vrot.lane.b32.xlu1 %v568_v53, %s1580_s20  ;;  %v1478_v41 = vpack.c.bf16 %v801_v38, %v800_v35 }
 0x3a3   :  { %v530_v58 = vadd.f32 %v1879_v51, %v1728_v62  ;;  %582 = vrot.lane.b32.xlu0 %v534_v56, %s1579_s19  ;;  %v569_v55 = vrot.slane %v534_v56, 2  ;;  %v554_v59 = vrot.slane %v534_v56, 6 }
 0x3a5   :  { %v570_v60 = vsel %vm563_vm7, %v567_v47, %v569_v55  ;;  %v535_v63 = vmul.f32 %v530_v58, %v1725_v61  ;;  %v555_v1 = vsel %vm548_vm8, %v552_v49, %v554_v59 }
 0x3a6   :  { %596 = vrot.lane.b32.xlu1 %v570_v60, %s1580_s20 }
 0x3a7   :  { %584 = vrot.lane.b32.xlu0 %v535_v63, %s1579_s19  ;;  %v571_v2 = vrot.slane %v535_v63, 2  ;;  %v542_v3 = vrot.slane %v535_v63, 6 }
 0x3a9   :  { %v572_v4 = vsel %vm563_vm7, %v569_v55, %v571_v2  ;;  %v562_v62 = vsel %vm548_vm8, %v542_v3, %v549_v37  ;;  %v556_v5 = vsel %vm548_vm8, %v554_v59, %v542_v3  ;;  %v575_v6 = vsel %vm563_vm7, %v571_v2, %v564_v34  ;;  %v798_v34 = vld [vmem:[%s2104_s1 + $0xe8] sm:$0xff] }
 0x3aa   :  { %598 = vrot.lane.b32.xlu1 %v572_v4, %s1580_s20  ;;  %v1475_v37 = vpack.c.bf16 %v799_v36, %v798_v34 }
 0x3ac   :  { %1488 = vmatpush3.bf16.msra.mxu1 %v1475_v37 }
 0x3ad   :  { %1487 = vmatprep.subr.bf16.mxu1 %v1578_v11 }
 0x3ae   :  { %600 = vrot.lane.b32.xlu1 %v575_v6, %s1580_s20 }
 0x3b0   :  { %1489 = vmatpush3.bf16.msra.mxu1 %v1478_v41 }
 0x3b1   :  { %1480 = vmatprep.subr.bf16.mxu1 %v1578_v11 }
 0x409   :  { %v577_v7 = vpop.permute.xlu0 %576 }
 0x40a   :  { %v607_v9 = vsel %vm219_vm3, %v562_v62, %v577_v7 }
 0x40d   :  { %v579_v8 = vpop.permute.xlu0 %578 }
 0x40e   :  { %v608_v14 = vsel %vm219_vm3, %v551_v46, %v579_v8 }
 0x410   :  { %v593_v10 = vpop.permute.xlu1 %592 }
 0x411   :  { %v612_v12 = vsel %vm225_vm5, %v607_v9, %v593_v10  ;;  %v581_v13 = vpop.permute.xlu0 %580 }
 0x412   :  { %1372 = vmatmul.mubr.msk.f32.vlgmr.msra.gmra.mrb[20].mxu0 %vm247_vm6, %v612_v12  ;;  %v609_v18 = vsel %vm219_vm3, %v553_v57, %v581_v13 }
 0x413   :  { %1374 = vmatprep.mubr.msk.f32.mxu0 %vm1576_vm1, %v1575_v0  ;;  %1476 = vmatpush3.bf16.msra.mxu0 %v1475_v37 }
 0x414   :  { %v595_v15 = vpop.permute.xlu1 %594  ;;  %1477 = vmatprep.subr.bf16.mxu0 %v1578_v11 }
 0x415   :  { %v613_v16 = vsel %vm225_vm5, %v608_v14, %v595_v15  ;;  %v583_v17 = vpop.permute.xlu0 %582 }
 0x416   :  { %1375 = vmatmul.mubr.msk.f32.gmra.mrb[22].mxu0 %vm247_vm6, %v613_v16  ;;  %v610_v23 = vsel %vm219_vm3, %v555_v1, %v583_v17 }
 0x417   :  { %1377 = vmatprep.mubr.msk.f32.mxu0 %vm1576_vm1, %v1575_v0  ;;  %1479 = vmatpush3.bf16.msra.mxu0 %v1478_v41 }
 0x418   :  { %v597_v20 = vpop.permute.xlu1 %596 }
 0x419   :  { %v614_v21 = vsel %vm225_vm5, %v609_v18, %v597_v20  ;;  %v585_v26 = vpop.permute.xlu0 %584 }
 0x41a   :  { %1378 = vmatmul.mubr.msk.f32.gmra.mrb[24].mxu0 %vm247_vm6, %v614_v21  ;;  %v611_v29 = vsel %vm219_vm3, %v556_v5, %v585_v26 }
 0x41b   :  { %1380 = vmatprep.mubr.msk.f32.mxu0 %vm1576_vm1, %v1575_v0 }
 0x41c   :  { %v599_v25 = vpop.permute.xlu1 %598 }
 0x41d   :  { %v615_v28 = vsel %vm225_vm5, %v610_v23, %v599_v25 }
 0x41e   :  { %1381 = vmatmul.mubr.msk.f32.gmra.mrb[26].mxu0 %vm247_vm6, %v615_v28 }
 0x41f   :  { %1383 = vmatprep.mubr.msk.f32.mxu0 %vm1576_vm1, %v1575_v0 }
 0x420   :  { %v601_v31 = vpop.permute.xlu1 %600 }
 0x421   :  { %v616_v33 = vsel %vm225_vm5, %v611_v29, %v601_v31 }
 0x422   :  { %1384 = vmatmul.mubr.msk.f32.gmra.mrb[28].mxu0 %vm247_vm6, %v616_v33 }
 0x423   :  { %1394 = vmatprep.mubr.msk.f32.mxu0 %vm1576_vm1, %v1575_v0 }
 0x4e5   :  { %v714_v45 = vpop.f32.mrb[20].mxu0 }
 0x4e6   :  { %v715_v46 = vadd.f32 %v714_v45, %v632_v44  ;;  %v1373_v48 = vpop.f32.mrb[21].mxu0 }
 0x4e8   :  { %v743_v47 = vsub.f32 0.0, %v715_v46 }
 0x4e9   :  { %v719_v49 = vpop.f32.mrb[22].mxu0 }
 0x4ea   :  { %v748_v50 = vmul.f32 1.442695, %v743_v47  ;;  %v720_v52 = vadd.f32 %v719_v49, %v632_v44  ;;  %v1376_v53 = vpop.f32.mrb[23].mxu0 }
 0x4ec   :  { %1530 = vpow2.f32 %v748_v50  ;;  %v744_v56 = vsub.f32 0.0, %v720_v52  ;;  %v804_v50 = vsub.s32 4, %v1666_v22 }
 0x4ed   :  { %v724_v57 = vpop.f32.mrb[24].mxu0 }
 0x4ee   :  { %v750_v58 = vmul.f32 1.442695, %v744_v56  ;;  %v725_v55 = vadd.f32 %v724_v57, %v632_v44  ;;  %v1379_v59 = vpop.f32.mrb[25].mxu0 }
 0x4f0   :  { %1532 = vpow2.f32 %v750_v58  ;;  %v745_v60 = vsub.f32 0.0, %v725_v55 }
 0x4f1   :  { %v729_v63 = vpop.f32.mrb[26].mxu0 }
 0x4f2   :  { %v752_v1 = vmul.f32 1.442695, %v745_v60  ;;  %v730_v2 = vadd.f32 %v729_v63, %v632_v44  ;;  %v1382_v3 = vpop.f32.mrb[27].mxu0 }
 0x4f3   :  { %v942_v3 = vld [vmem:[%s2104_s1 + $0x110] sm:$0xff] }
 0x4f4   :  { %1534 = vpow2.f32 %v752_v1  ;;  %v746_v4 = vsub.f32 0.0, %v730_v2 }
 0x4f5   :  { %v734_v62 = vpop.f32.mrb[28].mxu0 }
 0x4f6   :  { %v1531_v5 = vpop.eup %1530  ;;  %v754_v6 = vmul.f32 1.442695, %v746_v4  ;;  %v735_v7 = vadd.f32 %v734_v62, %v632_v44  ;;  %v1385_v8 = vpop.f32.mrb[29].mxu0  ;;  %v943_v4 = vld [vmem:[%s2104_s1 + $0x118] sm:$0xff] }
 0x4f7   :  { %v758_v9 = vadd.f32 1.0, %v1531_v5  ;;  %v944_v5 = vld [vmem:[%s2104_s1 + $0x120] sm:$0xff] }
 0x4f8   :  { %1536 = vpow2.f32 %v754_v6  ;;  %v747_v10 = vsub.f32 0.0, %v735_v7 }
 0x4f9   :  { %1538 = vrcp.f32 %v758_v9  ;;  %v1484_v9 = vpack.c.bf16 %v944_v5, %v943_v4 }
 0x4fa   :  { %v1533_v12 = vpop.eup %1532  ;;  %v756_v13 = vmul.f32 1.442695, %v747_v10 }
 0x4fb   :  { %v759_v14 = vadd.f32 1.0, %v1533_v12 }
 0x4fc   :  { %1540 = vpow2.f32 %v756_v13 }
 0x4fd   :  { %1542 = vrcp.f32 %v759_v14 }
 0x4fe   :  { %v1535_v15 = vpop.eup %1534 }
 0x4ff   :  { %v760_v16 = vadd.f32 1.0, %v1535_v15 }
 0x501   :  { %1544 = vrcp.f32 %v760_v16 }
 0x502   :  { %v1537_v17 = vpop.eup %1536 }
 0x503   :  { %v1539_v18 = vpop.eup %1538  ;;  %v761_v20 = vadd.f32 1.0, %v1537_v17 }
 0x504   :  { %778 = vrot.lane.b32.xlu0 %v1539_v18, %s1581_s29 }
 0x505   :  { %1546 = vrcp.f32 %v761_v20 }
 0x506   :  { %v1541_v21 = vpop.eup %1540 }
 0x507   :  { %v1543_v23 = vpop.eup %1542  ;;  %v762_v25 = vadd.f32 1.0, %v1541_v21 }
 0x508   :  { %780 = vrot.lane.b32.xlu1 %v1543_v23, %s1581_s29 }
 0x509   :  { %1548 = vrcp.f32 %v762_v25 }
 0x50a   :  { %1550 = vtanh.f32 %v715_v46 }
 0x50b   :  { %v1545_v26 = vpop.eup %1544  ;;  %1552 = vtanh.f32 %v720_v52  ;;  %v805_v52 = vrot.slane %v1678_v27, %v804_v50 }
 0x50c   :  { %782 = vrot.lane.b32.xlu0 %v1545_v26, %s1581_s29  ;;  %1554 = vtanh.f32 %v725_v55 }
 0x50d   :  { %1556 = vtanh.f32 %v730_v2  ;;  %v941_v2 = vld [vmem:[%s2104_s1 + $0x108] sm:$0xff]  ;;  %s1582_s1 = smov 126  }
 0x50e   :  { %1558 = vtanh.f32 %v735_v7  ;;  %v1481_v62 = vpack.c.bf16 %v942_v3, %v941_v2 }
 0x50f   :  { %v1547_v28 = vpop.eup %1546 }
 0x510   :  { %784 = vrot.lane.b32.xlu1 %v1547_v28, %s1581_s29 }
 0x513   :  { %v1549_v29 = vpop.eup %1548 }
 0x514   :  { %786 = vrot.lane.b32.xlu0 %v1549_v29, %s1581_s29  ;;  %v1551_v31 = vpop.eup %1550 }
 0x515   :  { %v1553_v36 = vpop.eup %1552 }
 0x516   :  { %v1555_v38 = vpop.eup %1554 }
 0x517   :  { %v1557_v44 = vpop.eup %1556 }
 0x518   :  { %v1559_v48 = vpop.eup %1558 }
 0x576   :  { %v779_v33 = vpop.permute.xlu0 %778 }
 0x577   :  { %v793_v34 = vmul.f32 %v1551_v31, %v779_v33 }
 0x579   :  { %1395 = vmatmul.mubr.msk.f32.vlgmr.msra.gmra.mrb[30].mxu0 %vm219_vm3, %v793_v34  ;;  %v947_v34 = vsub.s32 5, %v1666_v22 }
 0x57a   :  { %v781_v35 = vpop.permute.xlu1 %780  ;;  %1397 = vmatprep.mubr.msk.f32.mxu0 %vm1576_vm1, %v1575_v0 }
 0x57b   :  { %v794_v37 = vmul.f32 %v1553_v36, %v781_v35  ;;  %v948_v36 = vrot.slane %v1678_v27, %v947_v34 }
 0x57d   :  { %1398 = vmatmul.mubr.msk.f32.gmra.mrb[32].mxu0 %vm219_vm3, %v794_v37 }
 0x57e   :  { %v783_v41 = vpop.permute.xlu0 %782 }
 0x57f   :  { %v795_v43 = vmul.f32 %v1555_v38, %v783_v41 }
 0x581   :  { %1401 = vmatmul.mubr.msk.f32.vlgmr.msra.gmra.mrb[10].mxu1 %vm219_vm3, %v795_v43 }
 0x582   :  { %v785_v45 = vpop.permute.xlu1 %784  ;;  %1403 = vmatprep.mubr.msk.f32.mxu1 %vm1576_vm1, %v1575_v0  ;;  %1482 = vmatpush3.bf16.msra.mxu1 %v1481_v62  ;;  %v1571_v62 = vld [vmem:[%s2105_s0 + $0x8] sm:$0xff] }
 0x583   :  { %v796_v46 = vmul.f32 %v1557_v44, %v785_v45  ;;  %1483 = vmatprep.subr.bf16.mxu1 %v1578_v11 }
 0x585   :  { %1404 = vmatmul.mubr.msk.f32.gmra.mrb[12].mxu1 %vm219_vm3, %v796_v46 }
 0x586   :  { %v787_v47 = vpop.permute.xlu0 %786  ;;  %1406 = vmatprep.mubr.msk.f32.mxu1 %vm1576_vm1, %v1575_v0  ;;  %1485 = vmatpush3.bf16.msra.mxu1 %v1484_v9 }
 0x587   :  { %v797_v49 = vmul.f32 %v1559_v48, %v787_v47 }
 0x589   :  { %1407 = vmatmul.mubr.msk.f32.gmra.mrb[14].mxu1 %vm219_vm3, %v797_v49 }
 0x58a   :  { %1417 = vmatprep.mubr.msk.f32.mxu1 %vm1576_vm1, %v1575_v0 }
 0x64c   :  { %v887_v53 = vpop.f32.mrb[30].mxu0 }
 0x64d   :  { %v888_v56 = vadd.f32 %v887_v53, %v805_v52  ;;  %v1396_v57 = vpop.f32.mrb[31].mxu0 }
 0x64f   :  { %916 = vrot.lane.b32.xlu1 %v888_v56, %s1579_s19 }
 0x650   :  { %v892_v58 = vpop.f32.mrb[32].mxu0 }
 0x651   :  { %v893_v55 = vadd.f32 %v892_v58, %v805_v52  ;;  %v1399_v59 = vpop.f32.mrb[33].mxu0 }
 0x653   :  { %918 = vrot.lane.b32.xlu0 %v893_v55, %s1579_s19 }
 0x654   :  { %v897_v60 = vpop.f32.mrb[10].mxu1 }
 0x655   :  { %v898_v63 = vadd.f32 %v897_v60, %v805_v52  ;;  %v1402_v1 = vpop.f32.mrb[11].mxu1 }
 0x657   :  { %920 = vrot.lane.b32.xlu1 %v898_v63, %s1579_s19  ;;  %v1570_v63 = vld [vmem:[%s2105_s0] sm:$0xff] }
 0x658   :  { %v902_v6 = vpop.f32.mrb[12].mxu1 }
 0x659   :  { %v903_v7 = vadd.f32 %v902_v6, %v805_v52  ;;  %v1405_v8 = vpop.f32.mrb[13].mxu1 }
 0x65b   :  { %922 = vrot.lane.b32.xlu0 %v903_v7, %s1579_s19 }
 0x65c   :  { %v907_v10 = vpop.f32.mrb[14].mxu1 }
 0x65d   :  { %v908_v12 = vadd.f32 %v907_v10, %v805_v52  ;;  %v1408_v13 = vpop.f32.mrb[15].mxu1 }
 0x65f   :  { %924 = vrot.lane.b32.xlu1 %v908_v12, %s1579_s19 }
 0x6c1   :  { %v917_v14 = vpop.permute.xlu1 %916 }
 0x6c2   :  { %v931_v15 = vadd.f32 %v917_v14, %v1853_v19 }
 0x6c4   :  { %v936_v16 = vmul.f32 %v931_v15, %v1689_v32 }
 0x6c5   :  { %v919_v17 = vpop.permute.xlu0 %918 }
 0x6c6   :  { %v932_v18 = vadd.f32 %v919_v17, %v1858_v24  ;;  %954 = vrot.lane.b32.xlu0 %v936_v16, %s1581_s29 }
 0x6c8   :  { %v937_v11 = vmul.f32 %v932_v18, %v1696_v40 }
 0x6c9   :  { %v921_v20 = vpop.permute.xlu1 %920 }
 0x6ca   :  { %v933_v21 = vadd.f32 %v921_v20, %v1864_v30  ;;  %956 = vrot.lane.b32.xlu1 %v937_v11, %s1581_s29 }
 0x6cc   :  { %v938_v23 = vmul.f32 %v933_v21, %v1701_v42 }
 0x6cd   :  { %v923_v25 = vpop.permute.xlu0 %922 }
 0x6ce   :  { %v934_v26 = vadd.f32 %v923_v25, %v1870_v39  ;;  %958 = vrot.lane.b32.xlu0 %v938_v23, %s1581_s29  ;;  %v1573_v25 = vld [vmem:[%s2105_s0 + $0x20] sm:$0xff] }
 0x6d0   :  { %v939_v19 = vmul.f32 %v934_v26, %v1715_v54 }
 0x6d1   :  { %v925_v28 = vpop.permute.xlu1 %924 }
 0x6d2   :  { %v935_v24 = vadd.f32 %v925_v28, %v1879_v51  ;;  %960 = vrot.lane.b32.xlu1 %v939_v19, %s1581_s29  ;;  %v1574_v19 = vld [vmem:[%s2105_s0 + $0x18] sm:$0xff] }
 0x6d4   :  { %v940_v29 = vmul.f32 %v935_v24, %v1725_v61 }
 0x6d6   :  { %962 = vrot.lane.b32.xlu0 %v940_v29, %s1581_s29 }
 0x738   :  { %v955_v30 = vpop.permute.xlu0 %954 }
 0x739   :  { %1418 = vmatmul.mubr.msk.f32.vlgmr.msra.gmra.mrb[16].mxu1 %vm219_vm3, %v955_v30 }
 0x73a   :  { %1420 = vmatprep.mubr.msk.f32.mxu1 %vm1576_vm1, %v1575_v0 }
 0x73c   :  { %v957_v39 = vpop.permute.xlu1 %956 }
 0x73d   :  { %1421 = vmatmul.mubr.msk.f32.gmra.mrb[18].mxu1 %vm219_vm3, %v957_v39 }
 0x73e   :  { %1423 = vmatprep.mubr.msk.f32.mxu1 %vm1576_vm1, %v1575_v0 }
 0x740   :  { %v959_v31 = vpop.permute.xlu0 %958 }
 0x741   :  { %1424 = vmatmul.mubr.msk.f32.gmra.mrb[20].mxu1 %vm219_vm3, %v959_v31 }
 0x742   :  { %1426 = vmatprep.mubr.msk.f32.mxu1 %vm1576_vm1, %v1575_v0 }
 0x744   :  { %v961_v51 = vpop.permute.xlu1 %960 }
 0x745   :  { %1427 = vmatmul.mubr.msk.f32.gmra.mrb[22].mxu1 %vm219_vm3, %v961_v51 }
 0x746   :  { %1429 = vmatprep.mubr.msk.f32.mxu1 %vm1576_vm1, %v1575_v0 }
 0x748   :  { %v963_v33 = vpop.permute.xlu0 %962 }
 0x749   :  { %1430 = vmatmul.mubr.msk.f32.gmra.mrb[24].mxu1 %vm219_vm3, %v963_v33 }
 0x80c   :  { %v1040_v35 = vpop.f32.mrb[16].mxu1 }
 0x80d   :  { %v1041_v37 = vadd.f32 %v1040_v35, %v948_v36  ;;  %v1419_v38 = vpop.f32.mrb[17].mxu1 }
 0x80f   :  { %v2010_v41 = vmul.f32 %v1041_v37, %v1689_v32 }
 0x810   :  { %v1045_v43 = vpop.f32.mrb[18].mxu1 }
 0x811   :  { %v1069_v44 = vmul.f32 1.442695, %v2010_v41  ;;  %v1046_v45 = vadd.f32 %v1045_v43, %v948_v36  ;;  %1119 = vrot.lane.b32.xlu1 %v2010_v41, %s1582_s1  ;;  %v1422_v0 = vpop.f32.mrb[19].mxu1 }
 0x813   :  { %1560 = vpow2.f32 %v1069_v44  ;;  %v2016_v22 = vmul.f32 %v1046_v45, %v1696_v40 }
 0x814   :  { %v1050_v27 = vpop.f32.mrb[20].mxu1 }
 0x815   :  { %v1071_v46 = vmul.f32 1.442695, %v2016_v22  ;;  %v1051_v48 = vadd.f32 %v1050_v27, %v948_v36  ;;  %1121 = vrot.lane.b32.xlu0 %v2016_v22, %s1582_s1  ;;  %v1425_v47 = vpop.f32.mrb[21].mxu1 }
 0x817   :  { %1562 = vpow2.f32 %v1071_v46  ;;  %v2022_v49 = vmul.f32 %v1051_v48, %v1701_v42 }
 0x818   :  { %v1055_v50 = vpop.f32.mrb[22].mxu1 }
 0x819   :  { %v1073_v52 = vmul.f32 1.442695, %v2022_v49  ;;  %v1056_v53 = vadd.f32 %v1055_v50, %v948_v36  ;;  %1123 = vrot.lane.b32.xlu1 %v2022_v49, %s1582_s1  ;;  %v1428_v56 = vpop.f32.mrb[23].mxu1 }
 0x81b   :  { %1564 = vpow2.f32 %v1073_v52  ;;  %v2028_v57 = vmul.f32 %v1056_v53, %v1715_v54 }
 0x81c   :  { %v1060_v58 = vpop.f32.mrb[24].mxu1 }
 0x81d   :  { %v1561_v55 = vpop.eup %1560  ;;  %v1061_v59 = vadd.f32 %v1060_v58, %v948_v36  ;;  %1125 = vrot.lane.b32.xlu0 %v2028_v57, %s1582_s1  ;;  %v1431_v60 = vpop.f32.mrb[25].mxu1 }
 0x81e   :  { %v1079_v1 = vmul.f32 %v1570_v63, %v1561_v55 }
 0x81f   :  { %v2036_v2 = vmul.f32 %v1061_v59, %v1725_v61 }
 0x820   :  { %v1084_v3 = vmul.f32 %v1079_v1, %v1689_v32  ;;  %v1572_v32 = vld [vmem:[%s2105_s0 + $0x10] sm:$0xff] }
 0x821   :  { %v1563_v4 = vpop.eup %1562  ;;  %1127 = vrot.lane.b32.xlu1 %v2036_v2, %s1582_s1  ;;  %v1077_v16 = vmul.f32 1.442695, %v2036_v2 }
 0x822   :  { %1094 = vrot.lane.b32.xlu0 %v1084_v3, %s1582_s1  ;;  %v1080_v5 = vmul.f32 %v1571_v62, %v1563_v4 }
 0x823   :  { %1566 = vpow2.f32 %v1077_v16 }
 0x824   :  { %v1085_v6 = vmul.f32 %v1080_v5, %v1696_v40 }
 0x825   :  { %v1565_v7 = vpop.eup %1564 }
 0x826   :  { %1096 = vrot.lane.b32.xlu1 %v1085_v6, %s1582_s1  ;;  %v1081_v8 = vmul.f32 %v1572_v32, %v1565_v7 }
 0x828   :  { %v1086_v9 = vmul.f32 %v1081_v8, %v1701_v42  ;;  %v1075_v42 = vmul.f32 1.442695, %v2028_v57 }
 0x82a   :  { %1098 = vrot.lane.b32.xlu1 %v1086_v9, %s1582_s1  ;;  %1568 = vpow2.f32 %v1075_v42 }
 0x82d   :  { %v1567_v21 = vpop.eup %1566 }
 0x82e   :  { %v1083_v26 = vmul.f32 %v1573_v25, %v1567_v21 }
 0x830   :  { %v1088_v24 = vmul.f32 %v1083_v26, %v1725_v61 }
 0x834   :  { %v1569_v23 = vpop.eup %1568 }
 0x835   :  { %v1082_v28 = vmul.f32 %v1574_v19, %v1569_v23 }
 0x837   :  { %v1087_v29 = vmul.f32 %v1082_v28, %v1715_v54 }
 0x883   :  { %v1120_v10 = vpop.permute.xlu1 %1119 }
 0x884   :  { %v1135_v12 = vsel %vm1134_vm9, %v1120_v10, 0.0 }
 0x885   :  { %1136 = vadd.xlane.f32.xlu0 %v1135_v12 }
 0x887   :  { %v1122_v13 = vpop.permute.xlu0 %1121 }
 0x888   :  { %v1138_v40 = vsel %vm1134_vm9, %v1122_v13, 0.0 }
 0x889   :  { %1139 = vadd.xlane.f32.xlu1 %v1138_v40 }
 0x88b   :  { %v1124_v14 = vpop.permute.xlu1 %1123 }
 0x88c   :  { %v1141_v15 = vsel %vm1134_vm9, %v1124_v14, 0.0 }
 0x88d   :  { %1142 = vadd.xlane.f32.xlu0 %v1141_v15 }
 0x88f   :  { %v1126_v17 = vpop.permute.xlu0 %1125 }
 0x890   :  { %v1144_v18 = vsel %vm1134_vm9, %v1126_v17, 0.0 }
 0x891   :  { %1145 = vadd.xlane.f32.xlu0 %v1144_v18 }
 0x893   :  { %v1128_v11 = vpop.permute.xlu1 %1127 }
 0x894   :  { %v1147_v20 = vsel %vm1134_vm9, %v1128_v11, 0.0  ;;  %v1095_v39 = vpop.permute.xlu0 %1094 }
 0x895   :  { %1148 = vadd.xlane.f32.xlu1 %v1147_v20  ;;  %v1109_v31 = vadd.f32 %v1095_v39, %v2010_v41 }
 0x898   :  { %v1097_v30 = vpop.permute.xlu1 %1096 }
 0x899   :  { %v1110_v61 = vadd.f32 %v1097_v30, %v2016_v22 }
 0x89c   :  { %v1099_v51 = vpop.permute.xlu1 %1098 }
 0x89d   :  { %v1111_v38 = vadd.f32 %v1099_v51, %v2022_v49 }
 0x8a6   :  { %1102 = vrot.lane.b32.xlu1 %v1088_v24, %s1582_s1 }
 0x8a7   :  { %1100 = vrot.lane.b32.xlu0 %v1087_v29, %s1582_s1 }
 0x912   :  { %v1137_v33 = vpop.xlane.xlu0 %1136 }
 0x913   :  { %v1150_v34 = vsel %vm1134_vm9, %v1109_v31, %v1137_v33 }
 0x914   :  { %v1156_v36 = vsel %vm1155_vm10, %v1150_v34, 0.0 }
 0x915   :  { %1162 = vst.msk [vmem:[%s2106_s2] sm:$0xff] %vm1161_vm11, %v1156_v36 }
 0x916   :  { %v1140_v54 = vpop.xlane.xlu1 %1139 }
 0x917   :  { %v1151_v35 = vsel %vm1134_vm9, %v1110_v61, %v1140_v54 }
 0x918   :  { %v1157_v37 = vsel %vm1155_vm10, %v1151_v35, 0.0 }
 0x919   :  { %1163 = vst.msk [vmem:[%s2106_s2 + $0x8] sm:$0xff] %vm1161_vm11, %v1157_v37 }
 0x91a   :  { %v1143_v41 = vpop.xlane.xlu0 %1142 }
 0x91b   :  { %v1152_v43 = vsel %vm1134_vm9, %v1111_v38, %v1143_v41 }
 0x91c   :  { %v1158_v44 = vsel %vm1155_vm10, %v1152_v43, 0.0 }
 0x91d   :  { %1164 = vst.msk [vmem:[%s2106_s2 + $0x10] sm:$0xff] %vm1161_vm11, %v1158_v44 }
 0x91e   :  { %v1146_v45 = vpop.xlane.xlu0 %1145 }
 0x922   :  { %v1149_v0 = vpop.xlane.xlu1 %1148  ;;  %v1101_v22 = vpop.permute.xlu0 %1100 }
 0x923   :  { %v1112_v27 = vadd.f32 %v1101_v22, %v2028_v57 }
 0x925   :  { %v1153_v46 = vsel %vm1134_vm9, %v1112_v27, %v1146_v45 }
 0x926   :  { %v1159_v48 = vsel %vm1155_vm10, %v1153_v46, 0.0  ;;  %v1103_v47 = vpop.permute.xlu1 %1102 }
 0x927   :  { %1165 = vst.msk [vmem:[%s2106_s2 + $0x18] sm:$0xff] %vm1161_vm11, %v1159_v48  ;;  %v1113_v49 = vadd.f32 %v1103_v47, %v2036_v2 }
 0x929   :  { %v1154_v50 = vsel %vm1134_vm9, %v1113_v49, %v1149_v0 }
 0x92a   :  { %v1160_v52 = vsel %vm1155_vm10, %v1154_v50, 0.0 }
 0x92b   :  { %1166 = vst.msk [vmem:[%s2106_s2 + $0x20] sm:$0xff] %vm1161_vm11, %v1160_v52 }

</bundles_post_ra>
